<compile_context>
chip_gen: v6e
topology: v6e:2x2x1
jax: 0.10.0
libtpu: 0.0.40
codegen_flags: <defaults>
</compile_context>

<pallas_src>
import jax
import jax.numpy as jnp
from jax.experimental import pallas as pl
from jax.experimental.pallas import tpu as pltpu


def cnn_kernel(x_ref, w_ref, o_ref):
    """Conv1d + max-over-time for the whole batch in one invocation.

    x_ref: (K*Cin + 1, B*L_out)  im2col matrix with a trailing row of ones
                                 (x_ref[k*Cin + c, b*L_out + t] = x[b, c, t+k]).
    w_ref: (Cout, K*Cin + 1)     flattened conv weight with the bias as the
                                 last column (w_ref[o, k*Cin + c] = W[o, c, k]).
    o_ref: (Cout, B)             max-pooled output, one column per batch item.
    """
    B = o_ref.shape[1]
    L_out = x_ref.shape[1] // B

    # Single MXU matmul for the entire batch; bias already rides along via the
    # ones-row / bias-column augmentation (no separate VPU add needed).
    conv = jnp.dot(w_ref[...], x_ref[...],
                   preferred_element_type=jnp.float32)       # (Cout, B*L_out)

    # Per-batch max over time: static lane-segment reduce, written directly
    # into its output column (no concatenate, no transpose).
    for b in range(B):
        seg = conv[:, b * L_out:(b + 1) * L_out]              # (Cout, L_out)
        o_ref[:, b:b + 1] = jnp.max(seg, axis=1, keepdims=True).astype(o_ref.dtype)


def cnn_forward(x, weight, bias):
    """x: (B, Cin, L); weight: (Cout, Cin, K); bias: (Cout,) -> (B, Cout).

    Equivalent to torch.nn.Conv1d(Cin, Cout, K)(x).max(dim=2).values
    (stride=1, VALID padding).
    """
    B, Cin, L = x.shape
    Cout, _, K = weight.shape
    L_out = L - K + 1

    # ---- Wrapper-side layout plumbing (cheap XLA ops, off the kernel path) ----
    # im2col: x_col[k*Cin + c, b*L_out + t] = x[b, c, t + k]
    x_col = jnp.stack([x[:, :, k:k + L_out] for k in range(K)], axis=0)    # (K,B,Cin,L_out)
    x_col = jnp.transpose(x_col, (0, 2, 1, 3)).reshape(K * Cin, B * L_out)
    # Append a row of ones so the bias is applied inside the matmul.
    x_aug = jnp.concatenate(
        [x_col, jnp.ones((1, B * L_out), dtype=x.dtype)], axis=0)          # (K*Cin+1, B*L_out)

    # Weight flatten matching the im2col row order; bias as the last column.
    w_flat = jnp.transpose(weight, (0, 2, 1)).reshape(Cout, K * Cin)       # (Cout, K*Cin)
    w_aug = jnp.concatenate([w_flat, bias[:, None]], axis=1)               # (Cout, K*Cin+1)

    out_cb = pl.pallas_call(
        cnn_kernel,
        out_shape=jax.ShapeDtypeStruct((Cout, B), x.dtype),
        # No grid: one invocation, both (tiny) operands resident in VMEM.
        in_specs=[
            pl.BlockSpec(memory_space=pltpu.MemorySpace.VMEM),
            pl.BlockSpec(memory_space=pltpu.MemorySpace.VMEM),
        ],
        out_specs=pl.BlockSpec(memory_space=pltpu.MemorySpace.VMEM),
    )(x_aug, w_aug)

    # Trivial (Cout, B) -> (B, Cout) transpose outside the kernel.
    return out_cb.T


def cnn_reference(x, weight, bias):
    """Pure-JAX reference matching torch.nn.Conv1d + max over time."""
    conv = jax.lax.conv_general_dilated(
        x, weight, window_strides=(1,), padding="VALID",
        dimension_numbers=("NCH", "OIH", "NCH"),
    ) + bias[None, :, None]
    return jnp.max(conv, axis=2)


if __name__ == "__main__":
    # Shapes consistent with the module:
    #   batch=2, e_char (in_channels)=4, m_word (seq len)=16,
    #   e_word (out_channels)=8, window_size=5
    B, Cin, L, Cout, K = 2, 4, 16, 8, 5

    key = jax.random.PRNGKey(0)
    kx, kw, kb = jax.random.split(key, 3)

    x = jax.random.normal(kx, (B, Cin, L), dtype=jnp.float32)

    # Deterministic init mimicking torch.nn.Conv1d default:
    # U(-1/sqrt(Cin*K), 1/sqrt(Cin*K))
    bound = 1.0 / (Cin * K) ** 0.5
    weight = jax.random.uniform(kw, (Cout, Cin, K), jnp.float32, -bound, bound)
    bias = jax.random.uniform(kb, (Cout,), jnp.float32, -bound, bound)

    fwd = jax.jit(cnn_forward)
    out = jax.block_until_ready(fwd(x, weight, bias))

    ref = cnn_reference(x, weight, bias)
    assert out.shape == (B, Cout), out.shape
    assert jnp.allclose(out, ref, atol=1e-5, rtol=1e-5), (out, ref)

    print("KERNEL_OK")
</pallas_src>

<mosaic_0001>
module attributes {stable_mosaic.version = 11 : i64} {
  func.func @cnn_kernel(%arg0: memref<21x24xf32, #tpu.memory_space<vmem>>, %arg1: memref<8x21xf32, #tpu.memory_space<vmem>>, %arg2: memref<8x2xf32, #tpu.memory_space<vmem>>) attributes {dimension_semantics = [], scalar_prefetch = 0 : i64, scratch_operands = 0 : i64, tpu.core_type = #tpu.core_type<tc>} {
    %c0 = arith.constant 0 : index
    %c0_0 = arith.constant 0 : index
    %0 = vector.load %arg1[%c0, %c0_0] : memref<8x21xf32, #tpu.memory_space<vmem>>, vector<8x21xf32>
    %c0_1 = arith.constant 0 : index
    %c0_2 = arith.constant 0 : index
    %1 = vector.load %arg0[%c0_1, %c0_2] : memref<21x24xf32, #tpu.memory_space<vmem>>, vector<21x24xf32>
    %cst = arith.constant dense<0.000000e+00> : vector<8x24xf32>
    %2 = tpu.matmul %0, %1, %cst {dimension_numbers = #tpu.dot_dimension_numbers<[1], [0], [0], [1], [0, 0, 1, 1], [], []>} : vector<8x21xf32>, vector<21x24xf32>, vector<8x24xf32> -> vector<8x24xf32>
    %3 = vector.extract_strided_slice %2 {offsets = [0, 0], sizes = [8, 12], strides = [1, 1]} : vector<8x24xf32> to vector<8x12xf32>
    %cst_3 = arith.constant dense<0xFF800000> : vector<8xf32>
    %4 = vector.multi_reduction <maximumf>, %3, %cst_3 [1] : vector<8x12xf32> to vector<8xf32>
    %5 = vector.shape_cast %4 : vector<8xf32> to vector<8x1xf32>
    %c0_4 = arith.constant 0 : index
    %c0_5 = arith.constant 0 : index
    %6 = vector.load %arg2[%c0_4, %c0_5] : memref<8x2xf32, #tpu.memory_space<vmem>>, vector<8x1xf32>
    tpu.vector_store %arg2[%c0_4, %c0_5], %5 {strides = array<i32>} : memref<8x2xf32, #tpu.memory_space<vmem>>, vector<8x1xf32>,
    %7 = vector.extract_strided_slice %2 {offsets = [0, 12], sizes = [8, 12], strides = [1, 1]} : vector<8x24xf32> to vector<8x12xf32>
    %cst_6 = arith.constant dense<0xFF800000> : vector<8xf32>
    %8 = vector.multi_reduction <maximumf>, %7, %cst_6 [1] : vector<8x12xf32> to vector<8xf32>
    %9 = vector.shape_cast %8 : vector<8xf32> to vector<8x1xf32>
    %c0_7 = arith.constant 0 : index
    %c1 = arith.constant 1 : index
    %10 = vector.load %arg2[%c0_7, %c1] : memref<8x2xf32, #tpu.memory_space<vmem>>, vector<8x1xf32>
    tpu.vector_store %arg2[%c0_7, %c1], %9 {strides = array<i32>} : memref<8x2xf32, #tpu.memory_space<vmem>>, vector<8x1xf32>,
    return
  }
}

</mosaic_0001>

<bundles_post_ra>
// kernel: cnn_forward.1
= control target key start
LH: loop header
LB: loop body
LE: loop exit
PB: predicated region body
PF: predicated region fallthrough
CT: control target
= control target key end

     0   :  { %vm19_vm0 = vcmask 1044480   ;;  %v126_v0 = vmov 0.0   ;;  %vm127_vm1 = vmmov 0   ;;  %vm15_vm2 = vcmask 171008   ;;  %s161_s0 = inlined_call_operand.vmem [shape: f32[21,24], index: 0, kind: input, shape index: {}]   ;;  %s162_s1 = inlined_call_operand.vmem [shape: f32[8,21], index: 1, kind: input, shape index: {}]   ;;  %s163_s2 = inlined_call_operand.vmem [shape: f32[8,2], index: 2, kind: output, shape index: {}]  }
   0x1   :  { %115 = vmatprep.subr.mxu0 %v126_v0  ;;  %v14_v1 = vld [vmem:[%s161_s0 + $0x10] sm:$0x1f]  ;;  %v13_v2 = vld [vmem:[%s161_s0 + $0x8] sm:$0xff]  ;;  %121 = vmatprep.mubr.msk.f32.mxu0 %vm127_vm1, %v126_v0  ;;  %v12_v3 = vld [vmem:[%s161_s0] sm:$0xff]  ;;  %vm93_vm3 = vcmask 97280   ;;  %vm99_vm4 = vcmask 195680  }
   0x2   :  { %116 = vmatpush3.msk.msra.mxu0 %vm19_vm0, %v14_v1  ;;  %v11_v4 = vld [vmem:[%s162_s1] sm:$0xff]  ;;  %vm97_vm5 = vcmask 7168   ;;  %vm103_vm6 = vcmask 15368  }
   0x3   :  { %117 = vmatprep.subr.mxu0 %v126_v0 }
   0x4   :  { %118 = vmatpush3.msra.mxu0 %v13_v2 }
   0x5   :  { %119 = vmatprep.subr.mxu0 %v126_v0 }
   0x6   :  { %120 = vmatpush3.msra.mxu0 %v12_v3 }
   0x7   :  { %122 = vmatmul.mubr.msk.f32.vlgmr.msra.gmra.mxu0 %vm15_vm2, %v11_v4 }
  0xc7   :  { %v89_v5 = vpop.f32.mrf.mxu0 }
  0xc8   :  { %v94_v6 = vsel %vm93_vm3, %v89_v5, -inf  ;;  %v100_v8 = vsel %vm99_vm4, %v89_v5, -inf }
  0xc9   :  { %95 = vmax.xlane.f32.xlu0 %v94_v6  ;;  %v123_v7 = vpop.f32.mrf.mxu0 }
  0xcd   :  { %101 = vmax.xlane.f32.xlu0 %v100_v8 }
 0x152   :  { %v96_v9 = vpop.xlane.xlu0 %95 }
 0x153   :  { %98 = vst.msk [vmem:[%s163_s2] sm:$0xff] %vm97_vm5, %v96_v9 }
 0x156   :  { %v102_v10 = vpop.xlane.xlu0 %101 }
 0x157   :  { %104 = vst.msk [vmem:[%s163_s2] sm:$0xff] %vm103_vm6, %v102_v10 }

</bundles_post_ra>
